<compile_context>
chip_gen: v5e
topology: v5e:2x2
jax: 0.10.0
libtpu: 0.0.40
codegen_flags: <defaults>
</compile_context>

<pallas_src>
import math
import numpy as np

import jax
import jax.numpy as jnp
from jax import lax
from jax.experimental import pallas as pl
from jax.experimental.pallas import tpu as pltpu

_NEG_INF = -1e30  # large finite negative additive bias (representable in bf16)


# ----------------------------------------------------------------------------
# LogMask (static, host-side numpy — mirrors the PyTorch LogMask exactly)
# ----------------------------------------------------------------------------
def _row_mask(index, seq_length):
    subseq_length = int(seq_length / 2)
    log_l = math.ceil(np.log2(subseq_length))
    mask = np.zeros(seq_length, dtype=np.float32)
    if seq_length // subseq_length * 2 * log_l > index:
        mask[: index + 1] = 1
    else:
        while index >= 0:
            if index - log_l + 1 < 0:
                mask[:index] = 1
                break
            mask[index - log_l + 1 : index + 1] = 1
            for i in range(0, log_l):
                new_index = index - log_l + 1 - 2 ** i
                if index - new_index <= subseq_length and new_index >= 0:
                    mask[new_index] = 1
            index -= subseq_length
    return mask


def _log_sparse_allow(seq_length):
    allow = np.zeros((seq_length, seq_length), dtype=np.float32)
    for i in range(seq_length):
        allow[i] = _row_mask(i, seq_length)
    return allow


def log_sparse_additive_bias(seq_length):
    """(L, L): 0.0 where attention is allowed, -1e30 where disallowed."""
    allow = _log_sparse_allow(seq_length)
    return np.where(allow > 0, 0.0, _NEG_INF).astype(np.float32)


# ----------------------------------------------------------------------------
# VMEM sizing / query-tile selection (generation-aware)
# ----------------------------------------------------------------------------
def _vmem_capacity_bytes():
    try:
        return int(pltpu.get_tpu_info().vmem_capacity_bytes)
    except Exception:
        return 64 * 2 ** 20        # conservative (v7x-sized) fallback


def _vmem_bytes(L, HD, H, tq, with_attn, attn_bytes):
    """Rough bytes estimate: double-buffered blocks + in-kernel temporaries."""
    blk = (2 * tq * L * 2          # bias block (bf16), double-buffered
           + 2 * tq * HD * 4       # q block (f32)
           + 2 * tq * HD * 4       # out block (f32)
           + 4 * L * HD * 2)       # k + v blocks (bf16), double-buffered
    if with_attn:
        blk += 2 * H * tq * L * attn_bytes
    tmp = 6 * tq * L * 4           # score / exp / weight working tiles (f32)
    return blk + tmp


def _choose_q_tile(L, fits):
    """Largest divisor of L (multiple of 8 or L itself) that fits the budget;
    prefer 256/128-aligned tiles for MXU fill.  Never falls back to tiny tiles
    unless nothing fits, in which case the largest divisor <= 128 bounds VMEM."""
    divs = sorted({t for t in range(8, L, 8) if L % t == 0} | {L})
    fitting = [t for t in divs if t <= 2048 and fits(t)]
    if fitting:
        best = max(fitting)
        for align in (256, 128):
            aligned = [t for t in fitting if t % align == 0]
            if aligned and 2 * max(aligned) >= best:
                return max(aligned)
        return best
    small = [t for t in divs if t <= 128]
    return max(small) if small else min(divs)


# ----------------------------------------------------------------------------
# Pallas kernel: per-(batch, query-tile) masked softmax attention.
# Heads are handled with static lane-window slices of the (.., H*D) blocks.
# ----------------------------------------------------------------------------
def _make_attn_kernel(H, D, scale, with_attn):
    def kernel(bias_ref, q_ref, k_ref, v_ref, out_ref, *rest):
        attn_ref = rest[0] if with_attn else None
        bias = bias_ref[...].astype(jnp.float32)                 # (Tq, L)

        for h in range(H):                                       # static unroll
            lo = h * D
            # Scale Q (small tile) instead of the (Tq, L) score tile.
            qh = (q_ref[0, :, lo:lo + D] * scale).astype(jnp.bfloat16)  # (Tq, D)
            kh = k_ref[0, :, lo:lo + D]                                  # (L, D) bf16
            vh = v_ref[0, :, lo:lo + D]                                  # (L, D) bf16

            # scores (Tq, L): Q Kᵀ, contracting D (no transposed copy).
            s = lax.dot_general(qh, kh, (((1,), (1,)), ((), ())),
                                preferred_element_type=jnp.float32)
            s = s + bias                                         # additive log-sparse mask

            # Numerically stable softmax over keys.
            m = jnp.max(s, axis=-1, keepdims=True)
            p = jnp.exp(s - m)
            denom = jnp.sum(p, axis=-1, keepdims=True)

            if with_attn:
                # Exact normalization for the returned probabilities.
                w = p * pl.reciprocal(denom, approx=False)
                attn_ref[0, h] = w.astype(attn_ref.dtype)        # (Tq, L)
                oh = jnp.dot(w.astype(jnp.bfloat16), vh,
                             preferred_element_type=jnp.float32)  # (Tq, D)
            else:
                # Fast path: normalize AFTER the PV matmul (Tq*D vs Tq*L muls).
                oh = jnp.dot(p.astype(jnp.bfloat16), vh,
                             preferred_element_type=jnp.float32)
                oh = oh * pl.reciprocal(denom, approx=True)

            out_ref[0, :, lo:lo + D] = oh.astype(out_ref.dtype)

    return kernel


def multihead_logsparse_attention(query, key, value, *, return_attn=True,
                                  attn_dtype=jnp.float32):
    """
    query/key/value: (B, L, H, D) float32 (same convention as the PyTorch module).
    Returns (out, attn_weight) with shapes (B, L, H, D) and (B, H, L, L) when
    return_attn=True (matching the module); otherwise returns only out.
    attn_dtype=jnp.bfloat16 halves the dominant (B, H, L, L) HBM writeback.
    """
    B, L, H, D = query.shape
    HD = H * D
    scale = 1.0 / math.sqrt(D)

    # Free (contiguous) reshapes — no HBM relayout.  K/V cast to bf16 once:
    # halves their resident VMEM blocks and removes per-step in-kernel casts.
    q = query.reshape(B, L, HD)
    k = key.reshape(B, L, HD).astype(jnp.bfloat16)
    v = value.reshape(B, L, HD).astype(jnp.bfloat16)

    bias = jnp.asarray(log_sparse_additive_bias(L), dtype=jnp.bfloat16)  # (L, L)

    attn_bytes = jnp.dtype(attn_dtype).itemsize
    cap = _vmem_capacity_bytes()
    budget = int(0.4 * cap)

    def fits(t):
        return _vmem_bytes(L, HD, H, t, return_attn, attn_bytes) <= budget

    Tq = _choose_q_tile(L, fits)
    nq = L // Tq
    est = _vmem_bytes(L, HD, H, Tq, return_attn, attn_bytes)
    vmem_limit = int(max(32 << 20, min(int(0.75 * cap), 2 * est + (8 << 20))))

    in_specs = [
        pl.BlockSpec((Tq, L), lambda b, qi: (qi, 0)),             # bias (shared)
        pl.BlockSpec((1, Tq, HD), lambda b, qi: (b, qi, 0)),      # q tile
        pl.BlockSpec((1, L, HD), lambda b, qi: (b, 0, 0)),        # k (resident / batch)
        pl.BlockSpec((1, L, HD), lambda b, qi: (b, 0, 0)),        # v (resident / batch)
    ]
    out_shapes = [jax.ShapeDtypeStruct((B, L, HD), jnp.float32)]
    out_specs = [pl.BlockSpec((1, Tq, HD), lambda b, qi: (b, qi, 0))]   # lane-dense
    if return_attn:
        out_shapes.append(jax.ShapeDtypeStruct((B, H, L, L), attn_dtype))
        out_specs.append(pl.BlockSpec((1, H, Tq, L), lambda b, qi: (b, 0, qi, 0)))

    cost = pl.CostEstimate(
        flops=int(4 * B * H * L * L * D),
        transcendentals=int(B * H * L * L),
        bytes_accessed=int(B * L * HD * 4            # q read (f32)
                           + 2 * B * L * HD * 2      # k + v read (bf16)
                           + B * L * HD * 4          # out write (f32)
                           + B * L * L * 2           # bias re-read per batch (bf16)
                           + (B * H * L * L * attn_bytes if return_attn else 0)),
    )

    outs = pl.pallas_call(
        _make_attn_kernel(H, D, scale, return_attn),
        out_shape=tuple(out_shapes),
        grid_spec=pltpu.PrefetchScalarGridSpec(
            num_scalar_prefetch=0,
            grid=(B, nq),
            in_specs=in_specs,
            out_specs=tuple(out_specs),
        ),
        compiler_params=pltpu.CompilerParams(
            dimension_semantics=("parallel", "parallel"),
            vmem_limit_bytes=vmem_limit,
        ),
        cost_estimate=cost,
    )(bias, q, k, v)

    if return_attn:
        out_flat, attn = outs
    else:
        (out_flat,) = outs
        attn = None

    out = out_flat.reshape(B, L, H, D)   # free reshape, no relayout
    if return_attn:
        return out, attn
    return out


# ----------------------------------------------------------------------------
# Pure-JAX reference (f32, faithful to the PyTorch module) for a sanity check
# ----------------------------------------------------------------------------
def _reference(query, key, value):
    B, L, H, D = query.shape
    q = jnp.transpose(query, (0, 2, 1, 3))
    kt = jnp.transpose(key, (0, 2, 3, 1))
    s = jnp.matmul(q, kt) / math.sqrt(D)
    disallow = jnp.asarray(_log_sparse_allow(L)) == 0
    s = jnp.where(disallow[None, None], -jnp.inf, s)
    w = jax.nn.softmax(s, axis=-1)
    v = jnp.transpose(value, (0, 2, 1, 3))
    out = jnp.matmul(w, v)
    return jnp.transpose(out, (0, 2, 1, 3)), w


if __name__ == "__main__":
    B, L, H, D = 2, 16, 4, 32   # seq=16 exercises both branches of the log-sparse mask
    key0 = jax.random.PRNGKey(0)
    kq, kk, kv = jax.random.split(key0, 3)
    query = jax.random.normal(kq, (B, L, H, D), dtype=jnp.float32)
    key_t = jax.random.normal(kk, (B, L, H, D), dtype=jnp.float32)
    value = jax.random.normal(kv, (B, L, H, D), dtype=jnp.float32)

    # Default path (matches the module: f32 out + f32 attention weights).
    out, attn = multihead_logsparse_attention(query, key_t, value)
    out = jax.block_until_ready(out)
    attn = jax.block_until_ready(attn)

    # Fast path: skip the (B, H, L, L) attention-weight writeback entirely.
    out_fast = jax.block_until_ready(
        multihead_logsparse_attention(query, key_t, value, return_attn=False))

    # bf16 attention-weight writeback (halves the dominant HBM cost).
    out_b, attn_b = multihead_logsparse_attention(query, key_t, value,
                                                  attn_dtype=jnp.bfloat16)
    out_b = jax.block_until_ready(out_b)
    attn_b = jax.block_until_ready(attn_b)

    ref_out, ref_attn = _reference(query, key_t, value)
    # Tolerances account for bf16 matmul operands + approx reciprocal.
    np.testing.assert_allclose(np.asarray(attn), np.asarray(ref_attn),
                               atol=3e-2, rtol=3e-2)
    np.testing.assert_allclose(np.asarray(out), np.asarray(ref_out),
                               atol=7e-2, rtol=7e-2)
    np.testing.assert_allclose(np.asarray(out_fast), np.asarray(ref_out),
                               atol=7e-2, rtol=7e-2)
    np.testing.assert_allclose(np.asarray(attn_b.astype(jnp.float32)),
                               np.asarray(ref_attn), atol=5e-2, rtol=5e-2)
    np.testing.assert_allclose(np.asarray(out_b), np.asarray(ref_out),
                               atol=7e-2, rtol=7e-2)

    print("KERNEL_OK")
</pallas_src>

<mosaic_0001>
module attributes {stable_mosaic.version = 11 : i64} {
  func.func @kernel(%arg0: i32, %arg1: i32, %arg2: memref<16x16xbf16, #tpu.memory_space<vmem>>, %arg3: memref<1x16x128xf32, #tpu.memory_space<vmem>>, %arg4: memref<1x16x128xbf16, #tpu.memory_space<vmem>>, %arg5: memref<1x16x128xbf16, #tpu.memory_space<vmem>>, %arg6: memref<1x16x128xf32, #tpu.memory_space<vmem>>, %arg7: memref<1x4x16x16xf32, #tpu.memory_space<vmem>>) attributes {dimension_semantics = [#tpu.dimension_semantics<parallel>, #tpu.dimension_semantics<parallel>], iteration_bounds = array<i64: 2, 1>, scalar_prefetch = 0 : i64, scratch_operands = 0 : i64, tpu.core_type = #tpu.core_type<tc>, window_params = [{transform_indices = @transform_0, window_bounds = array<i64: 16, 16>}, {transform_indices = @transform_1, window_bounds = array<i64: 1, 16, 128>}, {transform_indices = @transform_2, window_bounds = array<i64: 1, 16, 128>}, {transform_indices = @transform_3, window_bounds = array<i64: 1, 16, 128>}, {transform_indices = @transform_4, window_bounds = array<i64: 1, 16, 128>}, {transform_indices = @transform_5, window_bounds = array<i64: 1, 4, 16, 16>}]} {
    %c0 = arith.constant 0 : index
    %c0_0 = arith.constant 0 : index
    %0 = vector.load %arg2[%c0, %c0_0] : memref<16x16xbf16, #tpu.memory_space<vmem>>, vector<16x16xbf16>
    %1 = arith.extf %0 : vector<16x16xbf16> to vector<16x16xf32>
    %c0_1 = arith.constant 0 : index
    %c0_2 = arith.constant 0 : index
    %c0_3 = arith.constant 0 : index
    %2 = vector.load %arg3[%c0_1, %c0_2, %c0_3] : memref<1x16x128xf32, #tpu.memory_space<vmem>>, vector<1x16x32xf32>
    %3 = vector.shape_cast %2 : vector<1x16x32xf32> to vector<16x32xf32>
    %cst = arith.constant 0.176776692 : f32
    %4 = vector.broadcast %cst : f32 to vector<16x32xf32>
    %5 = arith.mulf %3, %4 : vector<16x32xf32>
    %6 = arith.truncf %5 : vector<16x32xf32> to vector<16x32xbf16>
    %c0_4 = arith.constant 0 : index
    %c0_5 = arith.constant 0 : index
    %c0_6 = arith.constant 0 : index
    %7 = vector.load %arg4[%c0_4, %c0_5, %c0_6] : memref<1x16x128xbf16, #tpu.memory_space<vmem>>, vector<1x16x32xbf16>
    %8 = vector.shape_cast %7 : vector<1x16x32xbf16> to vector<16x32xbf16>
    %c0_7 = arith.constant 0 : index
    %c0_8 = arith.constant 0 : index
    %c0_9 = arith.constant 0 : index
    %9 = vector.load %arg5[%c0_7, %c0_8, %c0_9] : memref<1x16x128xbf16, #tpu.memory_space<vmem>>, vector<1x16x32xbf16>
    %10 = vector.shape_cast %9 : vector<1x16x32xbf16> to vector<16x32xbf16>
    %cst_10 = arith.constant dense<0.000000e+00> : vector<16x16xf32>
    %11 = tpu.matmul %6, %8, %cst_10 {dimension_numbers = #tpu.dot_dimension_numbers<[1], [1], [0], [0], [0, 0, 1, 0], [], []>} : vector<16x32xbf16>, vector<16x32xbf16>, vector<16x16xf32> -> vector<16x16xf32>
    %12 = arith.addf %11, %1 : vector<16x16xf32>
    %cst_11 = arith.constant dense<0xFF800000> : vector<16xf32>
    %13 = vector.multi_reduction <maximumf>, %12, %cst_11 [1] : vector<16x16xf32> to vector<16xf32>
    %14 = vector.shape_cast %13 : vector<16xf32> to vector<16x1xf32>
    %15 = vector.broadcast %14 : vector<16x1xf32> to vector<16x16xf32>
    %16 = arith.subf %12, %15 : vector<16x16xf32>
    %17 = math.exp %16 : vector<16x16xf32>
    %cst_12 = arith.constant dense<0.000000e+00> : vector<16xf32>
    %18 = vector.multi_reduction <add>, %17, %cst_12 [1] : vector<16x16xf32> to vector<16xf32>
    %19 = vector.shape_cast %18 : vector<16xf32> to vector<16x1xf32>
    %20 = tpu.reciprocal %19 : vector<16x1xf32> -> vector<16x1xf32>
    %21 = vector.broadcast %20 : vector<16x1xf32> to vector<16x16xf32>
    %22 = arith.mulf %17, %21 : vector<16x16xf32>
    %c0_13 = arith.constant 0 : index
    %c0_14 = arith.constant 0 : index
    %c0_15 = arith.constant 0 : index
    %c0_16 = arith.constant 0 : index
    %23 = vector.load %arg7[%c0_13, %c0_14, %c0_15, %c0_16] : memref<1x4x16x16xf32, #tpu.memory_space<vmem>>, vector<1x1x16x16xf32>
    %24 = vector.shape_cast %23 : vector<1x1x16x16xf32> to vector<16x16xf32>
    %25 = vector.shape_cast %22 : vector<16x16xf32> to vector<1x1x16x16xf32>
    tpu.vector_store %arg7[%c0_13, %c0_14, %c0_15, %c0_16], %25 {strides = array<i32>} : memref<1x4x16x16xf32, #tpu.memory_space<vmem>>, vector<1x1x16x16xf32>,
    %26 = arith.truncf %22 : vector<16x16xf32> to vector<16x16xbf16>
    %cst_17 = arith.constant dense<0.000000e+00> : vector<16x32xf32>
    %27 = tpu.matmul %26, %10, %cst_17 {dimension_numbers = #tpu.dot_dimension_numbers<[1], [0], [0], [1], [0, 0, 1, 1], [], []>} : vector<16x16xbf16>, vector<16x32xbf16>, vector<16x32xf32> -> vector<16x32xf32>
    %c0_18 = arith.constant 0 : index
    %c0_19 = arith.constant 0 : index
    %c0_20 = arith.constant 0 : index
    %28 = vector.load %arg6[%c0_18, %c0_19, %c0_20] : memref<1x16x128xf32, #tpu.memory_space<vmem>>, vector<1x16x32xf32>
    %29 = vector.shape_cast %28 : vector<1x16x32xf32> to vector<16x32xf32>
    %30 = vector.shape_cast %27 : vector<16x32xf32> to vector<1x16x32xf32>
    tpu.vector_store %arg6[%c0_18, %c0_19, %c0_20], %30 {strides = array<i32>} : memref<1x16x128xf32, #tpu.memory_space<vmem>>, vector<1x16x32xf32>,
    %c0_21 = arith.constant 0 : index
    %c0_22 = arith.constant 0 : index
    %c32 = arith.constant 32 : index
    %31 = vector.load %arg3[%c0_21, %c0_22, %c32] : memref<1x16x128xf32, #tpu.memory_space<vmem>>, vector<1x16x32xf32>
    %32 = vector.shape_cast %31 : vector<1x16x32xf32> to vector<16x32xf32>
    %cst_23 = arith.constant 0.176776692 : f32
    %33 = vector.broadcast %cst_23 : f32 to vector<16x32xf32>
    %34 = arith.mulf %32, %33 : vector<16x32xf32>
    %35 = arith.truncf %34 : vector<16x32xf32> to vector<16x32xbf16>
    %c0_24 = arith.constant 0 : index
    %c0_25 = arith.constant 0 : index
    %c32_26 = arith.constant 32 : index
    %36 = vector.load %arg4[%c0_24, %c0_25, %c32_26] : memref<1x16x128xbf16, #tpu.memory_space<vmem>>, vector<1x16x32xbf16>
    %37 = vector.shape_cast %36 : vector<1x16x32xbf16> to vector<16x32xbf16>
    %c0_27 = arith.constant 0 : index
    %c0_28 = arith.constant 0 : index
    %c32_29 = arith.constant 32 : index
    %38 = vector.load %arg5[%c0_27, %c0_28, %c32_29] : memref<1x16x128xbf16, #tpu.memory_space<vmem>>, vector<1x16x32xbf16>
    %39 = vector.shape_cast %38 : vector<1x16x32xbf16> to vector<16x32xbf16>
    %cst_30 = arith.constant dense<0.000000e+00> : vector<16x16xf32>
    %40 = tpu.matmul %35, %37, %cst_30 {dimension_numbers = #tpu.dot_dimension_numbers<[1], [1], [0], [0], [0, 0, 1, 0], [], []>} : vector<16x32xbf16>, vector<16x32xbf16>, vector<16x16xf32> -> vector<16x16xf32>
    %41 = arith.addf %40, %1 : vector<16x16xf32>
    %cst_31 = arith.constant dense<0xFF800000> : vector<16xf32>
    %42 = vector.multi_reduction <maximumf>, %41, %cst_31 [1] : vector<16x16xf32> to vector<16xf32>
    %43 = vector.shape_cast %42 : vector<16xf32> to vector<16x1xf32>
    %44 = vector.broadcast %43 : vector<16x1xf32> to vector<16x16xf32>
    %45 = arith.subf %41, %44 : vector<16x16xf32>
    %46 = math.exp %45 : vector<16x16xf32>
    %cst_32 = arith.constant dense<0.000000e+00> : vector<16xf32>
    %47 = vector.multi_reduction <add>, %46, %cst_32 [1] : vector<16x16xf32> to vector<16xf32>
    %48 = vector.shape_cast %47 : vector<16xf32> to vector<16x1xf32>
    %49 = tpu.reciprocal %48 : vector<16x1xf32> -> vector<16x1xf32>
    %50 = vector.broadcast %49 : vector<16x1xf32> to vector<16x16xf32>
    %51 = arith.mulf %46, %50 : vector<16x16xf32>
    %c0_33 = arith.constant 0 : index
    %c1 = arith.constant 1 : index
    %c0_34 = arith.constant 0 : index
    %c0_35 = arith.constant 0 : index
    %52 = vector.load %arg7[%c0_33, %c1, %c0_34, %c0_35] : memref<1x4x16x16xf32, #tpu.memory_space<vmem>>, vector<1x1x16x16xf32>
    %53 = vector.shape_cast %52 : vector<1x1x16x16xf32> to vector<16x16xf32>
    %54 = vector.shape_cast %51 : vector<16x16xf32> to vector<1x1x16x16xf32>
    tpu.vector_store %arg7[%c0_33, %c1, %c0_34, %c0_35], %54 {strides = array<i32>} : memref<1x4x16x16xf32, #tpu.memory_space<vmem>>, vector<1x1x16x16xf32>,
    %55 = arith.truncf %51 : vector<16x16xf32> to vector<16x16xbf16>
    %cst_36 = arith.constant dense<0.000000e+00> : vector<16x32xf32>
    %56 = tpu.matmul %55, %39, %cst_36 {dimension_numbers = #tpu.dot_dimension_numbers<[1], [0], [0], [1], [0, 0, 1, 1], [], []>} : vector<16x16xbf16>, vector<16x32xbf16>, vector<16x32xf32> -> vector<16x32xf32>
    %c0_37 = arith.constant 0 : index
    %c0_38 = arith.constant 0 : index
    %c32_39 = arith.constant 32 : index
    %57 = vector.load %arg6[%c0_37, %c0_38, %c32_39] : memref<1x16x128xf32, #tpu.memory_space<vmem>>, vector<1x16x32xf32>
    %58 = vector.shape_cast %57 : vector<1x16x32xf32> to vector<16x32xf32>
    %59 = vector.shape_cast %56 : vector<16x32xf32> to vector<1x16x32xf32>
    tpu.vector_store %arg6[%c0_37, %c0_38, %c32_39], %59 {strides = array<i32>} : memref<1x16x128xf32, #tpu.memory_space<vmem>>, vector<1x16x32xf32>,
    %c0_40 = arith.constant 0 : index
    %c0_41 = arith.constant 0 : index
    %c64 = arith.constant 64 : index
    %60 = vector.load %arg3[%c0_40, %c0_41, %c64] : memref<1x16x128xf32, #tpu.memory_space<vmem>>, vector<1x16x32xf32>
    %61 = vector.shape_cast %60 : vector<1x16x32xf32> to vector<16x32xf32>
    %cst_42 = arith.constant 0.176776692 : f32
    %62 = vector.broadcast %cst_42 : f32 to vector<16x32xf32>
    %63 = arith.mulf %61, %62 : vector<16x32xf32>
    %64 = arith.truncf %63 : vector<16x32xf32> to vector<16x32xbf16>
    %c0_43 = arith.constant 0 : index
    %c0_44 = arith.constant 0 : index
    %c64_45 = arith.constant 64 : index
    %65 = vector.load %arg4[%c0_43, %c0_44, %c64_45] : memref<1x16x128xbf16, #tpu.memory_space<vmem>>, vector<1x16x32xbf16>
    %66 = vector.shape_cast %65 : vector<1x16x32xbf16> to vector<16x32xbf16>
    %c0_46 = arith.constant 0 : index
    %c0_47 = arith.constant 0 : index
    %c64_48 = arith.constant 64 : index
    %67 = vector.load %arg5[%c0_46, %c0_47, %c64_48] : memref<1x16x128xbf16, #tpu.memory_space<vmem>>, vector<1x16x32xbf16>
    %68 = vector.shape_cast %67 : vector<1x16x32xbf16> to vector<16x32xbf16>
    %cst_49 = arith.constant dense<0.000000e+00> : vector<16x16xf32>
    %69 = tpu.matmul %64, %66, %cst_49 {dimension_numbers = #tpu.dot_dimension_numbers<[1], [1], [0], [0], [0, 0, 1, 0], [], []>} : vector<16x32xbf16>, vector<16x32xbf16>, vector<16x16xf32> -> vector<16x16xf32>
    %70 = arith.addf %69, %1 : vector<16x16xf32>
    %cst_50 = arith.constant dense<0xFF800000> : vector<16xf32>
    %71 = vector.multi_reduction <maximumf>, %70, %cst_50 [1] : vector<16x16xf32> to vector<16xf32>
    %72 = vector.shape_cast %71 : vector<16xf32> to vector<16x1xf32>
    %73 = vector.broadcast %72 : vector<16x1xf32> to vector<16x16xf32>
    %74 = arith.subf %70, %73 : vector<16x16xf32>
    %75 = math.exp %74 : vector<16x16xf32>
    %cst_51 = arith.constant dense<0.000000e+00> : vector<16xf32>
    %76 = vector.multi_reduction <add>, %75, %cst_51 [1] : vector<16x16xf32> to vector<16xf32>
    %77 = vector.shape_cast %76 : vector<16xf32> to vector<16x1xf32>
    %78 = tpu.reciprocal %77 : vector<16x1xf32> -> vector<16x1xf32>
    %79 = vector.broadcast %78 : vector<16x1xf32> to vector<16x16xf32>
    %80 = arith.mulf %75, %79 : vector<16x16xf32>
    %c0_52 = arith.constant 0 : index
    %c2 = arith.constant 2 : index
    %c0_53 = arith.constant 0 : index
    %c0_54 = arith.constant 0 : index
    %81 = vector.load %arg7[%c0_52, %c2, %c0_53, %c0_54] : memref<1x4x16x16xf32, #tpu.memory_space<vmem>>, vector<1x1x16x16xf32>
    %82 = vector.shape_cast %81 : vector<1x1x16x16xf32> to vector<16x16xf32>
    %83 = vector.shape_cast %80 : vector<16x16xf32> to vector<1x1x16x16xf32>
    tpu.vector_store %arg7[%c0_52, %c2, %c0_53, %c0_54], %83 {strides = array<i32>} : memref<1x4x16x16xf32, #tpu.memory_space<vmem>>, vector<1x1x16x16xf32>,
    %84 = arith.truncf %80 : vector<16x16xf32> to vector<16x16xbf16>
    %cst_55 = arith.constant dense<0.000000e+00> : vector<16x32xf32>
    %85 = tpu.matmul %84, %68, %cst_55 {dimension_numbers = #tpu.dot_dimension_numbers<[1], [0], [0], [1], [0, 0, 1, 1], [], []>} : vector<16x16xbf16>, vector<16x32xbf16>, vector<16x32xf32> -> vector<16x32xf32>
    %c0_56 = arith.constant 0 : index
    %c0_57 = arith.constant 0 : index
    %c64_58 = arith.constant 64 : index
    %86 = vector.load %arg6[%c0_56, %c0_57, %c64_58] : memref<1x16x128xf32, #tpu.memory_space<vmem>>, vector<1x16x32xf32>
    %87 = vector.shape_cast %86 : vector<1x16x32xf32> to vector<16x32xf32>
    %88 = vector.shape_cast %85 : vector<16x32xf32> to vector<1x16x32xf32>
    tpu.vector_store %arg6[%c0_56, %c0_57, %c64_58], %88 {strides = array<i32>} : memref<1x16x128xf32, #tpu.memory_space<vmem>>, vector<1x16x32xf32>,
    %c0_59 = arith.constant 0 : index
    %c0_60 = arith.constant 0 : index
    %c96 = arith.constant 96 : index
    %89 = vector.load %arg3[%c0_59, %c0_60, %c96] : memref<1x16x128xf32, #tpu.memory_space<vmem>>, vector<1x16x32xf32>
    %90 = vector.shape_cast %89 : vector<1x16x32xf32> to vector<16x32xf32>
    %cst_61 = arith.constant 0.176776692 : f32
    %91 = vector.broadcast %cst_61 : f32 to vector<16x32xf32>
    %92 = arith.mulf %90, %91 : vector<16x32xf32>
    %93 = arith.truncf %92 : vector<16x32xf32> to vector<16x32xbf16>
    %c0_62 = arith.constant 0 : index
    %c0_63 = arith.constant 0 : index
    %c96_64 = arith.constant 96 : index
    %94 = vector.load %arg4[%c0_62, %c0_63, %c96_64] : memref<1x16x128xbf16, #tpu.memory_space<vmem>>, vector<1x16x32xbf16>
    %95 = vector.shape_cast %94 : vector<1x16x32xbf16> to vector<16x32xbf16>
    %c0_65 = arith.constant 0 : index
    %c0_66 = arith.constant 0 : index
    %c96_67 = arith.constant 96 : index
    %96 = vector.load %arg5[%c0_65, %c0_66, %c96_67] : memref<1x16x128xbf16, #tpu.memory_space<vmem>>, vector<1x16x32xbf16>
    %97 = vector.shape_cast %96 : vector<1x16x32xbf16> to vector<16x32xbf16>
    %cst_68 = arith.constant dense<0.000000e+00> : vector<16x16xf32>
    %98 = tpu.matmul %93, %95, %cst_68 {dimension_numbers = #tpu.dot_dimension_numbers<[1], [1], [0], [0], [0, 0, 1, 0], [], []>} : vector<16x32xbf16>, vector<16x32xbf16>, vector<16x16xf32> -> vector<16x16xf32>
    %99 = arith.addf %98, %1 : vector<16x16xf32>
    %cst_69 = arith.constant dense<0xFF800000> : vector<16xf32>
    %100 = vector.multi_reduction <maximumf>, %99, %cst_69 [1] : vector<16x16xf32> to vector<16xf32>
    %101 = vector.shape_cast %100 : vector<16xf32> to vector<16x1xf32>
    %102 = vector.broadcast %101 : vector<16x1xf32> to vector<16x16xf32>
    %103 = arith.subf %99, %102 : vector<16x16xf32>
    %104 = math.exp %103 : vector<16x16xf32>
    %cst_70 = arith.constant dense<0.000000e+00> : vector<16xf32>
    %105 = vector.multi_reduction <add>, %104, %cst_70 [1] : vector<16x16xf32> to vector<16xf32>
    %106 = vector.shape_cast %105 : vector<16xf32> to vector<16x1xf32>
    %107 = tpu.reciprocal %106 : vector<16x1xf32> -> vector<16x1xf32>
    %108 = vector.broadcast %107 : vector<16x1xf32> to vector<16x16xf32>
    %109 = arith.mulf %104, %108 : vector<16x16xf32>
    %c0_71 = arith.constant 0 : index
    %c3 = arith.constant 3 : index
    %c0_72 = arith.constant 0 : index
    %c0_73 = arith.constant 0 : index
    %110 = vector.load %arg7[%c0_71, %c3, %c0_72, %c0_73] : memref<1x4x16x16xf32, #tpu.memory_space<vmem>>, vector<1x1x16x16xf32>
    %111 = vector.shape_cast %110 : vector<1x1x16x16xf32> to vector<16x16xf32>
    %112 = vector.shape_cast %109 : vector<16x16xf32> to vector<1x1x16x16xf32>
    tpu.vector_store %arg7[%c0_71, %c3, %c0_72, %c0_73], %112 {strides = array<i32>} : memref<1x4x16x16xf32, #tpu.memory_space<vmem>>, vector<1x1x16x16xf32>,
    %113 = arith.truncf %109 : vector<16x16xf32> to vector<16x16xbf16>
    %cst_74 = arith.constant dense<0.000000e+00> : vector<16x32xf32>
    %114 = tpu.matmul %113, %97, %cst_74 {dimension_numbers = #tpu.dot_dimension_numbers<[1], [0], [0], [1], [0, 0, 1, 1], [], []>} : vector<16x16xbf16>, vector<16x32xbf16>, vector<16x32xf32> -> vector<16x32xf32>
    %c0_75 = arith.constant 0 : index
    %c0_76 = arith.constant 0 : index
    %c96_77 = arith.constant 96 : index
    %115 = vector.load %arg6[%c0_75, %c0_76, %c96_77] : memref<1x16x128xf32, #tpu.memory_space<vmem>>, vector<1x16x32xf32>
    %116 = vector.shape_cast %115 : vector<1x16x32xf32> to vector<16x32xf32>
    %117 = vector.shape_cast %114 : vector<16x32xf32> to vector<1x16x32xf32>
    tpu.vector_store %arg6[%c0_75, %c0_76, %c96_77], %117 {strides = array<i32>} : memref<1x16x128xf32, #tpu.memory_space<vmem>>, vector<1x16x32xf32>,
    return
  }
  func.func @transform_0(%arg0: i32, %arg1: i32) -> (i32, i32) {
    %c0_i32 = arith.constant 0 : i32
    %c0_i32_0 = arith.constant 0 : i32
    return %arg1, %c0_i32 : i32, i32
  }
  func.func @transform_1(%arg0: i32, %arg1: i32) -> (i32, i32, i32) {
    %c0_i32 = arith.constant 0 : i32
    %c0_i32_0 = arith.constant 0 : i32
    return %arg0, %arg1, %c0_i32 : i32, i32, i32
  }
  func.func @transform_2(%arg0: i32, %arg1: i32) -> (i32, i32, i32) {
    %c0_i32 = arith.constant 0 : i32
    %c0_i32_0 = arith.constant 0 : i32
    %c0_i32_1 = arith.constant 0 : i32
    return %arg0, %c0_i32, %c0_i32_0 : i32, i32, i32
  }
  func.func @transform_3(%arg0: i32, %arg1: i32) -> (i32, i32, i32) {
    %c0_i32 = arith.constant 0 : i32
    %c0_i32_0 = arith.constant 0 : i32
    %c0_i32_1 = arith.constant 0 : i32
    return %arg0, %c0_i32, %c0_i32_0 : i32, i32, i32
  }
  func.func @transform_4(%arg0: i32, %arg1: i32) -> (i32, i32, i32) {
    %c0_i32 = arith.constant 0 : i32
    %c0_i32_0 = arith.constant 0 : i32
    return %arg0, %arg1, %c0_i32 : i32, i32, i32
  }
  func.func @transform_5(%arg0: i32, %arg1: i32) -> (i32, i32, i32, i32) {
    %c0_i32 = arith.constant 0 : i32
    %c0_i32_0 = arith.constant 0 : i32
    %c0_i32_1 = arith.constant 0 : i32
    return %arg0, %c0_i32, %arg1, %c0_i32_0 : i32, i32, i32, i32
  }
}

</mosaic_0001>

<bundles_post_ra>
// kernel: tpu_custom_call.1
= control target key start
LH: loop header
LB: loop body
LE: loop exit
PB: predicated region body
PF: predicated region fallthrough
CT: control target
= control target key end

     0   :  { %s1957_s0 = inlined_call_operand.hbm [shape: bf16[16,16], index: 0, kind: input, shape index: {}]   ;;  %s1958_s1 = inlined_call_operand.hbm [shape: f32[2,16,128], index: 1, kind: input, shape index: {}]   ;;  %s1959_s2 = inlined_call_operand.hbm [shape: bf16[2,16,128], index: 2, kind: input, shape index: {}]   ;;  %s1960_s3 = inlined_call_operand.hbm [shape: bf16[2,16,128], index: 3, kind: input, shape index: {}]   ;;  %s1961_s4 = inlined_call_operand.hbm [shape: f32[2,16,128], index: 4, kind: output, shape index: {0}]   ;;  %s1962_s5 = inlined_call_operand.hbm [shape: f32[2,4,16,16], index: 5, kind: output, shape index: {1}]  }
   0x1   :  { %1969 = sst [smem:[#allocation24_spill]] %s1957_s0 }
   0x2   :  { %1970 = sst [smem:[#allocation25_spill]] %s1958_s1 }
   0x3   :  { %11 = vsyncpa [#allocation3], 0 }
   0x4   :  { %12 = vsyncpa [#allocation6], 0 }
   0x5   :  { %14 = vsyncpa [#allocation6 + $0x1], 0 }
   0x6   :  { %15 = vsyncpa [#allocation9], 0 }
   0x7   :  { %17 = vsyncpa [#allocation9 + $0x1], 0 }
   0x8   :  { %18 = vsyncpa [#allocation4], 0 }
   0x9   :  { %20 = vsyncpa [#allocation4 + $0x1], 0 }
   0xa   :  { %21 = vsyncpa [#allocation12], 0 }
   0xb   :  { %23 = vsyncpa [#allocation12 + $0x1], 0  ;;  %s1611_s18 = smov 0   ;;  %s1613_s19 = smov 0  }
   0xc   :  { %s1615_s20 = smov 0   ;;  %s1617_s21 = smov 0  }
   0xd   :  { %s1619_s22 = smov 0   ;;  %s1621_s23 = smov 0  }
   0xe LB: > { %1971 = sst [smem:[#allocation18_spill]] %s1557_s20  ;;  %s41_s24 = sadd.s32 1, %s1565_s22  ;;  %s1569_s23 = sphi %s1621_s23, %s29_s23   ;;  %s1565_s22 = sphi %s1619_s22, %s1990_s22   ;;  %s1561_s21 = sphi %s1617_s21, %s1989_s21   ;;  %s1557_s20 = sphi %s1615_s20, %s1988_s20   ;;  %s1553_s19 = sphi %s1613_s19, %s1992_s19   ;;  %s1549_s18 = sphi %s1611_s18, %s1991_s18  }
   0xf   : > { %1972 = sst [smem:[#allocation19_spill]] %s1565_s22  ;;  %s76_s25 = sadd.s32 1, %s1557_s20 }
  0x10   : > { %1973 = sst [smem:[#allocation20_spill]] %s1569_s23  ;;  %p43_p0 = scmp.ge.s32.totalorder %s41_s24, 2 }
  0x11   : > { %p83_p1 = scmp.ne.s32.totalorder %s1557_s20, %s1553_s19  ;;  %p84_p2 = scmp.eq.s32.totalorder %s1569_s23, 0 }
  0x12   : > { %p1110_p3 = scmp.ge.s32.totalorder %s1569_s23, 2  ;;  %s1994_s24 = smov (%p43_p0, %s41_s24), 0 }
  0x13   : > { %1974 = sst [smem:[#allocation21_spill]] %s1994_s24  ;;  %p1652_p4 = por %p84_p2, %p83_p1 }
  0x14   : > { %p1234_p5 = scmp.lt.s32.totalorder %s1569_s23, 2  ;;  %s71_s27 = ssub.s32 %s1565_s22, %s1994_s24 }
  0x15   : > { %s238_s28 = sand.u32 1, %s1569_s23   ;;  %p74_p6 = scmp.eq.s32.totalorder %s71_s27, 0 }
  0x16   : > { %s1661_s29 = sand.u32 1, %s1557_s20   ;;  %s1181_s30 = sshll.u32 %s1565_s22, 4 }
  0x17   : > { %s1665_s6 = scalar_select %p74_p6, %s1557_s20, %s76_s25  }
  0x18   : > { %s1111_s7 = sshll.u32 %s1661_s29, 4  ;;  %s1977_s1 = sld [smem:[#allocation25_spill]] }
  0x19   : > { %1976 = sst [smem:[#allocation22_spill]] %s1665_s6  ;;  %s242_s12 = scalar_lea.vmem [#allocation5], %s1111_s7 }
  0x1a   : > { %s252_s13 = sshll.u32 %s242_s12, 4  ;;  %p1675_p7 = pnand %p1234_p5, %p1652_p4  ;;  %s253_s13 = int_to_ptr.vmem [resolvable:$true] %s252_s13 }
  0x1b   : > { %s1679_s15 = scalar_lea.sflag [#allocation6], %s238_s28  ;;  %s1571_s16 = smov 128  }
  0x1c   : > { %s1572_s17 = smov 8   ;;  %s1685_s25 = sadd.s32 4294967295, %s1569_s23  }
  0x1d   : > { %s1107_s26 = sadd.s32 4294967294, %s1569_s23   ;;  %p89_p8 = scmp.ne.s32.totalorder %s1553_s19, %s1549_s18 }
  0x1e   : > { %s249_s10 = scalar_lea.hbm %s1977_s1, %s1181_s30  ;;  %p90_p9 = scmp.eq.s32.totalorder %s1685_s25, 0 }
  0x1f   : > { %s250_s11 = sshll.u32 %s249_s10, 4  ;;  %p167_p10 = scmp.eq.s32.totalorder %s1685_s25, 1  ;;  %s251_s11 = int_to_ptr.hbm [resolvable:$true] %s250_s11 }
  0x20   : > { %1219 = dma.hbm_to_vmem [thread:$0]  (!%p1675_p7), %s251_s11, 256, %s253_s13, %s1679_s15, %s1571_s16, %s1571_s16, %s1572_s17  }
  0x21   : > { %p173_p11 = scmp.eq.s32.totalorder %s1107_s26, 1  ;;  %p1108_p12 = scmp.ge.s32.totalorder %s1569_s23, 1 }
  0x22   : > { %p1695_p13 = por %p90_p9, %p89_p8  ;;  %p1702_p0 = por %p167_p10, %p83_p1 }
  0x23   : > { %p1706_p2 = por %p173_p11, %p89_p8  ;;  %p208_p4 = scmp.lt.s32.totalorder %s1569_s23, 3 }
  0x24   : > { %s1983_s0 = sld [smem:[#allocation24_spill]]  ;;  %s1573_s11 = smov [#allocation2]  }
  0x25   : > { %s1981_s30 = scalar_select %p1706_p2, 1, 0 }
  0x26   : > { %p1714_p5 = pnand %p1108_p12, %p208_p4  ;;  %s224_s12 = sshll.u32 %s1573_s11, 4  ;;  %s225_s12 = int_to_ptr.vmem [resolvable:$true] %s224_s12 }
  0x27   : > { %1982 = sst [smem:[#allocation23_spill]] %s1981_s30  ;;  %s1114_s13 = sshll.u32 %s1661_s29, 3 }
  0x28   : > { %p1212_p1 = pneg %p1714_p5  ;;  %s1182_s16 = sshll.u32 %s1565_s22, 3 }
  0x29   : > { %s271_s7 = scalar_lea.hbm %s1959_s2, %s1182_s16  ;;  %s1574_s8 = smov 64  }
  0x2a   : > { %s222_s9 = sshll.u32 %s1983_s0, 4  ;;  %p1213_p6 = pnand %p1212_p1, %p90_p9  ;;  %s223_s9 = int_to_ptr.hbm [resolvable:$true] %s222_s9 }
  0x2b   : > { %s1575_s0 = smov 4   ;;  %s272_s1 = sshll.u32 %s271_s7, 4  ;;  %s273_s1 = int_to_ptr.hbm [resolvable:$true] %s272_s1 }
  0x2c   : > { %1215 = dma.hbm_to_vmem [thread:$0]  (!%p1213_p6), %s223_s9, 128, %s225_s12, [#allocation3], %s1574_s8, %s1574_s8, %s1575_s0  }
  0x2d   : > { %s266_s24 = scalar_lea.vmem [#allocation7], %s1114_s13  ;;  %s293_s22 = scalar_lea.hbm %s1960_s3, %s1182_s16 }
  0x2e   : > { %s274_s6 = sshll.u32 %s266_s24, 4  ;;  %s288_s23 = scalar_lea.vmem [#allocation8], %s1114_s13  ;;  %s275_s6 = int_to_ptr.vmem [resolvable:$true] %s274_s6 }
  0x2f   : > { %1222 = dma.hbm_to_vmem [thread:$0]  (!%p1675_p7), %s273_s1, 128, %s275_s6, %s1679_s15, %s1574_s8, %s1574_s8, %s1575_s0  }
  0x30   : > { %s296_s30 = sshll.u32 %s288_s23, 4  ;;  %s294_s17 = sshll.u32 %s293_s22, 4  ;;  %s297_s30 = int_to_ptr.vmem [resolvable:$true] %s296_s30  ;;  %s295_s17 = int_to_ptr.hbm [resolvable:$true] %s294_s17 }
  0x31   : > { %s285_s26 = scalar_lea.sflag [#allocation9], %s1661_s29  ;;  %308 = sbr.rel (%p1714_p5) target bundleno = 1172 (0x494), region = 36 }
  0x32   : > { %1225 = dma.hbm_to_vmem [thread:$0]  (!%p1675_p7), %s295_s17, 128, %s297_s30, %s285_s26, %s1574_s8, %s1574_s8, %s1575_s0  }
  0x36   : > { %1528 = dma.done.wait (%p90_p9), [#allocation3], 128  }
  0x37   : > { %1530 = vsyncadd (%p90_p9), [#allocation3], 4294967168  ;;  %s315_s1 = sand.u32 1, %s1685_s25   ;;  %s1744_s20 = sand.u32 1, %s1553_s19  }
  0x38   : > { %s1122_s22 = sshll.u32 %s1744_s20, 4  ;;  %s316_s23 = scalar_lea.sflag [#allocation6], %s315_s1 }
  0x39   : > { %s319_s0 = scalar_lea.vmem [#allocation5], %s1122_s22 }
  0x3a   : > { %1532 = dma.done.wait (%p1695_p13), %s316_s23, 384  }
  0x3b   : > { %1534 = vsyncadd (%p1695_p13), %s316_s23, 4294966912  ;;  %s1123_s24 = sshll.u32 %s1744_s20, 3  ;;  %s336_s6 = scalar_lea.sflag [#allocation9], %s1744_s20 }
  0x3c   : > { %s1754_s29 = scalar_lea.vmem [#allocation7], %s1123_s24  ;;  %s1757_s14 = scalar_lea.vmem [#allocation8], %s1123_s24 }
  0x3d   : > { %1536 = dma.done.wait (%p1695_p13), %s336_s6, 128  }
  0x3e   : > { %1538 = vsyncadd (%p1695_p13), %s336_s6, 4294967168  ;;  %vm405_vm0 = vcmask 261120   ;;  %v1184_v0 = vld [vmem:[%s1754_s29] sm:$0xff]  ;;  %v392_v2 = vld [vmem:[%s319_s0 + $0x8] sm:$0xff]  ;;  %s1576_s15 = smov 96   ;;  %vm426_vm1 = vcmask 130048  }
  0x3f   : > { %v391_v1 = vld [vmem:[%s319_s0] sm:$0xff]  ;;  %v410_v3 = vsel %vm405_vm0, %v1184_v0, 0  ;;  %v394_v5 = vmul.f32 0.17677669, %v392_v2  ;;  %v1195_v8 = vld [vmem:[#allocation2] sm:$0xff]   ;;  %s1577_s25 = smov 64  }
  0x40   : > { %v393_v4 = vmul.f32 0.17677669, %v391_v1  ;;  %419 = vmatpush.bf16.xpose.msra.mxu0 %v410_v3  ;;  %v1186_v7 = vld [vmem:[%s1754_s29] sm:$0xff]  ;;  %v1769_v9 = vunpack.c.l.bf16 %v1195_v8  ;;  %v1773_v13 = vunpack.c.h.bf16 %v1195_v8  ;;  %s1578_s27 = smov 32   ;;  %v1185_v32 = vld [vmem:[%s1757_s14] sm:$0xff]  ;;  %s1126_s30 = sshll.u32 %s1744_s20, 6 }
  0x41   : > { %520 = vrot.lane.b32.xlu2 %v1186_v7, %s1576_s15  ;;  %v1188_v18 = vld [vmem:[%s1754_s29] sm:$0xff]  ;;  %494 = vmatpush.bf16.msra.mxu1 %v1185_v32  ;;  %s1794_s9 = scalar_lea.vmem [#allocation11], %s1126_s30  ;;  %s1806_s10 = scalar_lea.vmem [#allocation10], %s1122_s22 }
  0x42   : > { %v395_v6 = vpack.c.bf16 %v394_v5, %v393_v4  ;;  %v1190_v31 = vld [vmem:[%s1754_s29] sm:$0xff]  ;;  %s1193_s12 = sshll.u32 %s1561_s21, 6  ;;  %s923_s8 = sshll.u32 %s1794_s9, 4  ;;  %s924_s8 = int_to_ptr.vmem [resolvable:$true] %s923_s8 }
  0x43   : > { %s922_s7 = scalar_lea.hbm %s1962_s5, %s1193_s12  ;;  %s890_s17 = scalar_lea.sflag [#allocation12], %s1744_s20 }
  0x44   : > { %s925_s11 = sshll.u32 %s922_s7, 4  ;;  %s1467_s0 = scalar_lea.hbm %s1962_s5, 128  ;;  %s926_s11 = int_to_ptr.hbm [resolvable:$true] %s925_s11 }
  0x45   : > { %s1461_s26 = sshra.s32 %s926_s11, 4  ;;  %s1462_s26 = int_to_ptr.hbm [resolvable:$true] %s1461_s26 }
  0x46   : > { %s1463_s1 = scalar_lea.hbm %s1462_s26, 64  ;;  %p1468_p10 = scmp.lt.s32.totalorder %s1462_s26, %s1962_s5 }
  0x47   : > { %1131 = vmatmul.msk.bf16.vlgmr.msra.gmra.mxu0 %vm405_vm0, %v395_v6  ;;  %p1464_p7 = scmp.ne.s32.totalorder %s1462_s26, %s1463_s1  ;;  %p1469_p11 = scmp.lt.s32.totalorder %s1467_s0, %s1463_s1 }
  0x49   : > { %513 = vrot.lane.b32.xlu2 %v395_v6, %s1576_s15  ;;  %p1465_p8 = pnand %p1464_p7, %p1702_p0  ;;  %p1470_p12 = por %p1469_p11, %p1468_p10 }
  0x4b   : > { %p1466_p9 = pneg %p1465_p8 }
  0x4d   : > { %p1471_p13 = pnand %p1470_p12, %p1466_p9 }
  0x51   : > { %640 = vrot.lane.b32.xlu2 %v395_v6, %s1577_s25 }
  0x59   : > { %767 = vrot.lane.b32.xlu2 %v395_v6, %s1578_s27 }
  0x9b   : > { %v521_v17 = vpop.permute.xlu2 %520 }
  0x9c   : > { %v526_v19 = vsel %vm405_vm0, %v521_v17, 0 }
  0x9d   : > { %535 = vmatpush.bf16.xpose.msra.mxu2 %v526_v19 }
  0xa3   : > { %v514_v20 = vpop.permute.xlu2 %513 }
  0xa4   : > { %1141 = vmatmul.msk.bf16.vlgmr.msra.gmra.mxu2 %vm405_vm0, %v514_v20 }
  0xab   : > { %v641_v2 = vpop.permute.xlu2 %640 }
  0xb3   : > { %v768_v5 = vpop.permute.xlu2 %767 }
  0xc4   : > { %v421_v10 = vpop.f32.mrf.mxu0 }
  0xc5   : > { %v422_v11 = vadd.f32 %v1769_v9, %v421_v10 }
  0xc7   : > { %v427_v12 = vsel %vm426_vm1, %v422_v11, -inf }
  0xc8   : > { %428 = vmax.xlane.f32.xlu0 %v427_v12 }
  0xcc   : > { %v423_v14 = vpop.f32.mrf.mxu0 }
  0xcd   : > { %v424_v15 = vadd.f32 %v1773_v13, %v423_v14 }
  0xcf   : > { %v430_v16 = vsel %vm426_vm1, %v424_v15, -inf }
  0xd0   : > { %431 = vmax.xlane.f32.xlu0 %v430_v16 }
  0xe4   : > { %647 = vrot.lane.b32.xlu0 %v1188_v18, %s1577_s25 }
 0x127   : > { %v537_v36 = vpop.f32.mrf.mxu2 }
 0x128   : > { %v538_v41 = vadd.f32 %v1769_v9, %v537_v36 }
 0x12a   : > { %v542_v49 = vsel %vm426_vm1, %v538_v41, -inf }
 0x12b   : > { %543 = vmax.xlane.f32.xlu2 %v542_v49 }
 0x12f   : > { %v539_v42 = vpop.f32.mrf.mxu2 }
 0x130   : > { %v540_v44 = vadd.f32 %v1773_v13, %v539_v42 }
 0x132   : > { %v545_v48 = vsel %vm426_vm1, %v540_v44, -inf }
 0x133   : > { %546 = vmax.xlane.f32.xlu0 %v545_v48 }
 0x13b   : > { %v429_v21 = vpop.xlane.xlu0 %428 }
 0x13c   : > { %v433_v22 = vsub.f32 %v422_v11, %v429_v21 }
 0x13e   : > { %v435_v23 = vmul.f32 1.442695, %v433_v22 }
 0x140   : > { %1295 = vpow2.f32 %v435_v23 }
 0x143   : > { %v432_v24 = vpop.xlane.xlu0 %431 }
 0x144   : > { %v434_v25 = vsub.f32 %v424_v15, %v432_v24 }
 0x146   : > { %v1296_v26 = vpop.eup %1295  ;;  %v437_v27 = vmul.f32 1.442695, %v434_v25 }
 0x147   : > { %v439_v28 = vsel %vm426_vm1, %v1296_v26, 0.0 }
 0x148   : > { %1297 = vpow2.f32 %v437_v27  ;;  %440 = vadd.xlane.f32.xlu1 %v439_v28 }
 0x14e   : > { %v1298_v29 = vpop.eup %1297 }
 0x14f   : > { %v442_v30 = vsel %vm426_vm1, %v1298_v29, 0.0 }
 0x150   : > { %443 = vadd.xlane.f32.xlu1 %v442_v30 }
 0x156   : > { %v648_v33 = vpop.permute.xlu0 %647 }
 0x157   : > { %v653_v34 = vsel %vm405_vm0, %v648_v33, 0 }
 0x158   : > { %662 = vmatpush.bf16.xpose.msrb.mxu1 %v653_v34 }
 0x169   : > { %774 = vrot.lane.b32.xlu1 %v1190_v31, %s1578_s27 }
 0x19e   : > { %v544_v10 = vpop.xlane.xlu2 %543 }
 0x19f   : > { %v548_v14 = vsub.f32 %v538_v41, %v544_v10 }
 0x1a1   : > { %v550_v17 = vmul.f32 1.442695, %v548_v14  ;;  %v1187_v14 = vld [vmem:[%s1757_s14] sm:$0xff] }
 0x1a6   : > { %v547_v7 = vpop.xlane.xlu0 %546 }
 0x1a7   : > { %v549_v8 = vsub.f32 %v540_v44, %v547_v7 }
 0x1a9   : > { %v552_v11 = vmul.f32 1.442695, %v549_v8 }
 0x1bb   : > { %v441_v35 = vpop.xlane.xlu1 %440 }
 0x1bc   : > { %1299 = vrcp.f32 %v441_v35  ;;  %v456_v43 = vand.u32 2147483648, %v441_v35  ;;  %v454_v46 = vand.u32 2147483647, %v441_v35  ;;  %vm450_vm3 = vweird.f32 %v441_v35 }
 0x1be   : > { %v457_v51 = vor.u32 1.1754944e-38, %v456_v43  ;;  %vm455_vm5 = vcmp.eq.f32.partialorder %v454_v46, 8.507059e+37 }
 0x1c2   : > { %v1300_v37 = vpop.eup %1299 }
 0x1c3   : > { %v446_v38 = vmul.f32 %v1300_v37, %v441_v35  ;;  %v444_v39 = vpop.xlane.xlu1 %443  ;;  %vm451_vm2 = vweird.f32 %v1300_v37 }
 0x1c4   : > { %1301 = vrcp.f32 %v444_v39  ;;  %vm452_vm4 = vmor %vm450_vm3, %vm451_vm2  ;;  %v470_v57 = vand.u32 2147483648, %v444_v39  ;;  %v468_v59 = vand.u32 2147483647, %v444_v39  ;;  %vm464_vm7 = vweird.f32 %v444_v39 }
 0x1c5   : > { %v447_v40 = vsub.f32 1.0, %v446_v38  ;;  %1303 = vpow2.f32 %v552_v11 }
 0x1c6   : > { %v471_v61 = vor.u32 1.1754944e-38, %v470_v57  ;;  %vm469_vm9 = vcmp.eq.f32.partialorder %v468_v59, 8.507059e+37  ;;  %1305 = vpow2.f32 %v550_v17 }
 0x1c7   : > { %v448_v45 = vmul.f32 %v1300_v37, %v447_v40 }
 0x1c9   : > { %v449_v47 = vadd.f32 %v1300_v37, %v448_v45 }
 0x1ca   : > { %v1302_v50 = vpop.eup %1301 }
 0x1cb   : > { %v460_v52 = vmul.f32 %v1302_v50, %v444_v39  ;;  %v453_v53 = vsel %vm452_vm4, %v1300_v37, %v449_v47  ;;  %vm465_vm6 = vweird.f32 %v1302_v50  ;;  %v1304_v20 = vpop.eup %1303 }
 0x1cc   : > { %v458_v54 = vsel %vm455_vm5, %v457_v51, %v453_v53  ;;  %vm466_vm8 = vmor %vm464_vm7, %vm465_vm6  ;;  %v557_v23 = vsel %vm426_vm1, %v1304_v20, 0.0  ;;  %v1820_v24 = vpop.eup %1305 }
 0x1cd   : > { %v461_v55 = vsub.f32 1.0, %v460_v52  ;;  %v473_v56 = vmul.f32 %v1296_v26, %v458_v54  ;;  %v554_v27 = vsel %vm426_vm1, %v1820_v24, 0.0 }
 0x1cf   : > { %v462_v58 = vmul.f32 %v1302_v50, %v461_v55  ;;  %475 = vst.msk [vmem:[%s1794_s9] sm:$0xff] %vm426_vm1, %v473_v56 }
 0x1d1   : > { %v463_v60 = vadd.f32 %v1302_v50, %v462_v58 }
 0x1d3   : > { %v467_v62 = vsel %vm466_vm8, %v1302_v50, %v463_v60 }
 0x1d4   : > { %v472_v63 = vsel %vm469_vm9, %v471_v61, %v467_v62 }
 0x1d5   : > { %v474_v0 = vmul.f32 %v1298_v29, %v472_v63 }
 0x1d7   : > { %476 = vst.msk [vmem:[%s1794_s9 + $0x8] sm:$0xff] %vm426_vm1, %v474_v0  ;;  %v477_v1 = vpack.c.bf16 %v474_v0, %v473_v56 }
 0x1d9   : > { %1136 = vmatmul.msk.bf16.vlgmr.msra.gmra.mxu1 %vm426_vm1, %v477_v1 }
 0x1db   : > { %v775_v3 = vpop.permute.xlu1 %774 }
 0x1dc   : > { %v780_v4 = vsel %vm405_vm0, %v775_v3, 0  ;;  %v1189_v3 = vld [vmem:[%s1757_s14] sm:$0xff] }
 0x1dd   : > { %789 = vmatpush.bf16.xpose.msrb.mxu0 %v780_v4 }
 0x1e4   : > { %1165 = vmatmul.msk.bf16.vlgmr.msrb.gmra.mxu0 %vm405_vm0, %v768_v5 }
 0x1e9   : > { %1153 = vmatmul.msk.bf16.vlgmr.msrb.gmra.mxu1 %vm405_vm0, %v641_v2 }
 0x256   : > { %v496_v6 = vpop.f32.mrf.mxu1 }
 0x257   : > { %501 = vst.msk [vmem:[%s1806_s10] sm:$0xff] %vm405_vm0, %v496_v6 }
 0x25e   : > { %v498_v12 = vpop.f32.mrf.mxu1 }
 0x25f   : > { %502 = vst.msk [vmem:[%s1806_s10 + $0x8] sm:$0xff] %vm405_vm0, %v498_v12 }
 0x261   : > { %v791_v15 = vpop.f32.mrf.mxu0 }
 0x262   : > { %v792_v16 = vadd.f32 %v1769_v9, %v791_v15  ;;  %v1191_v15 = vld [vmem:[%s1757_s14] sm:$0xff] }
 0x264   : > { %v796_v18 = vsel %vm426_vm1, %v792_v16, -inf }
 0x265   : > { %797 = vmax.xlane.f32.xlu0 %v796_v18 }
 0x266   : > { %v664_v19 = vpop.f32.mrf.mxu1 }
 0x267   : > { %v1815_v21 = vadd.f32 %v1769_v9, %v664_v19 }
 0x269   : > { %v669_v22 = vsel %vm426_vm1, %v1815_v21, -inf  ;;  %v793_v9 = vpop.f32.mrf.mxu0 }
 0x26a   : > { %670 = vmax.xlane.f32.xlu1 %v669_v22  ;;  %v794_v29 = vadd.f32 %v1773_v13, %v793_v9 }
 0x26c   : > { %v799_v30 = vsel %vm426_vm1, %v794_v29, -inf }
 0x26d   : > { %558 = vadd.xlane.f32.xlu0 %v557_v23 }
 0x26e   : > { %v666_v25 = vpop.f32.mrf.mxu1 }
 0x26f   : > { %v667_v26 = vadd.f32 %v1773_v13, %v666_v25 }
 0x271   : > { %v672_v28 = vsel %vm426_vm1, %v667_v26, -inf }
 0x272   : > { %673 = vmax.xlane.f32.xlu2 %v672_v28  ;;  %555 = vadd.xlane.f32.xlu1 %v554_v27 }
 0x27a   : > { %800 = vmax.xlane.f32.xlu2 %v799_v30 }
 0x2d8   : > { %v798_v31 = vpop.xlane.xlu0 %797 }
 0x2d9   : > { %v802_v32 = vsub.f32 %v792_v16, %v798_v31 }
 0x2db   : > { %v804_v33 = vmul.f32 1.442695, %v802_v32 }
 0x2dd   : > { %1307 = vpow2.f32 %v804_v33  ;;  %v671_v34 = vpop.xlane.xlu1 %670 }
 0x2de   : > { %v675_v52 = vsub.f32 %v1815_v21, %v671_v34 }
 0x2e0   : > { %v559_v35 = vpop.xlane.xlu0 %558  ;;  %v677_v1 = vmul.f32 1.442695, %v675_v52 }
 0x2e1   : > { %1309 = vrcp.f32 %v559_v35  ;;  %v583_v44 = vand.u32 2147483647, %v559_v35  ;;  %v585_v45 = vand.u32 2147483648, %v559_v35  ;;  %vm579_vm10 = vweird.f32 %v559_v35 }
 0x2e3   : > { %v1828_v36 = vpop.eup %1307  ;;  %vm584_vm13 = vcmp.eq.f32.partialorder %v583_v44, 8.507059e+37  ;;  %v586_v53 = vor.u32 1.1754944e-38, %v585_v45 }
 0x2e4   : > { %v808_v37 = vsel %vm426_vm1, %v1828_v36, 0.0 }
 0x2e5   : > { %v674_v38 = vpop.xlane.xlu2 %673  ;;  %v556_v39 = vpop.xlane.xlu1 %555  ;;  %809 = vadd.xlane.f32.xlu0 %v808_v37 }
 0x2e6   : > { %v676_v40 = vsub.f32 %v667_v26, %v674_v38  ;;  %1311 = vrcp.f32 %v556_v39  ;;  %v569_v56 = vand.u32 2147483647, %v556_v39  ;;  %v571_v57 = vand.u32 2147483648, %v556_v39 }
 0x2e7   : > { %v1310_v13 = vpop.eup %1309  ;;  %vm565_vm15 = vweird.f32 %v556_v39 }
 0x2e8   : > { %v575_v41 = vmul.f32 %v1310_v13, %v559_v35  ;;  %v679_v42 = vmul.f32 1.442695, %v676_v40  ;;  %vm580_vm11 = vweird.f32 %v1310_v13  ;;  %v572_v2 = vor.u32 1.1754944e-38, %v571_v57 }
 0x2e9   : > { %vm581_vm12 = vmor %vm579_vm10, %vm580_vm11  ;;  %vm570_vm2 = vcmp.eq.f32.partialorder %v569_v56, 8.507059e+37 }
 0x2ea   : > { %v576_v43 = vsub.f32 1.0, %v575_v41  ;;  %1313 = vpow2.f32 %v679_v42 }
 0x2ec   : > { %v1312_v46 = vpop.eup %1311  ;;  %v577_v47 = vmul.f32 %v1310_v13, %v576_v43 }
 0x2ed   : > { %v561_v48 = vmul.f32 %v1312_v46, %v556_v39  ;;  %v801_v49 = vpop.xlane.xlu2 %800  ;;  %vm566_vm14 = vweird.f32 %v1312_v46 }
 0x2ee   : > { %v578_v50 = vadd.f32 %v1310_v13, %v577_v47  ;;  %v803_v51 = vsub.f32 %v794_v29, %v801_v49  ;;  %vm567_vm0 = vmor %vm565_vm15, %vm566_vm14 }
 0x2ef   : > { %v562_v54 = vsub.f32 1.0, %v561_v48 }
 0x2f0   : > { %v1833_v55 = vpop.eup %1313  ;;  %v806_v58 = vmul.f32 1.442695, %v803_v51  ;;  %v582_v59 = vsel %vm581_vm12, %v1310_v13, %v578_v50 }
 0x2f1   : > { %v563_v60 = vmul.f32 %v1312_v46, %v562_v54  ;;  %v684_v61 = vsel %vm426_vm1, %v1833_v55, 0.0  ;;  %v587_v62 = vsel %vm584_vm13, %v586_v53, %v582_v59 }
 0x2f2   : > { %1315 = vpow2.f32 %v806_v58  ;;  %685 = vadd.xlane.f32.xlu1 %v684_v61  ;;  %v1837_v63 = vmul.f32 %v1304_v20, %v587_v62 }
 0x2f3   : > { %v564_v0 = vadd.f32 %v1312_v46, %v563_v60  ;;  %1317 = vpow2.f32 %v677_v1 }
 0x2f4   : > { %1143 = vst.msk [vmem:[%s1794_s9 + $0x18] sm:$0xff] %vm426_vm1, %v1837_v63 }
 0x2f5   : > { %v568_v4 = vsel %vm567_vm0, %v1312_v46, %v564_v0 }
 0x2f6   : > { %v573_v5 = vsel %vm570_vm2, %v572_v2, %v568_v4 }
 0x2f7   : > { %v1844_v6 = vmul.f32 %v1820_v24, %v573_v5 }
 0x2f8   : > { %v1846_v7 = vpop.eup %1315 }
 0x2f9   : > { %v811_v8 = vsel %vm426_vm1, %v1846_v7, 0.0  ;;  %726 = vrot.lane.b32.xlu0 %v1189_v3, %s1577_s25  ;;  %1142 = vst.msk [vmem:[%s1794_s9 + $0x10] sm:$0xff] %vm426_vm1, %v1844_v6  ;;  %v593_v10 = vpack.c.bf16 %v1837_v63, %v1844_v6  ;;  %v1856_v11 = vpop.eup %1317 }
 0x2fa   : > { %812 = vadd.xlane.f32.xlu2 %v811_v8  ;;  %v681_v12 = vsel %vm426_vm1, %v1856_v11, 0.0 }
 0x302   : > { %682 = vadd.xlane.f32.xlu2 %v681_v12 }
 0x30b   : > { %599 = vrot.lane.b32.xlu1 %v1187_v14, %s1576_s15 }
 0x31a   : > { %853 = vrot.lane.b32.xlu2 %v1191_v15, %s1578_s27 }
 0x358   : > { %v810_v16 = vpop.xlane.xlu0 %809 }
 0x359   : > { %1319 = vrcp.f32 %v810_v16  ;;  %v825_v20 = vand.u32 2147483648, %v810_v16  ;;  %v823_v22 = vand.u32 2147483647, %v810_v16  ;;  %vm819_vm4 = vweird.f32 %v810_v16 }
 0x35b   : > { %v826_v25 = vor.u32 1.1754944e-38, %v825_v20  ;;  %vm824_vm6 = vcmp.eq.f32.partialorder %v823_v22, 8.507059e+37 }
 0x35f   : > { %v1320_v17 = vpop.eup %1319 }
 0x360   : > { %v815_v18 = vmul.f32 %v1320_v17, %v810_v16  ;;  %vm820_vm3 = vweird.f32 %v1320_v17 }
 0x361   : > { %vm821_vm5 = vmor %vm819_vm4, %vm820_vm3 }
 0x362   : > { %v816_v19 = vsub.f32 1.0, %v815_v18 }
 0x364   : > { %v817_v21 = vmul.f32 %v1320_v17, %v816_v19 }
 0x365   : > { %v686_v23 = vpop.xlane.xlu1 %685 }
 0x366   : > { %v818_v24 = vadd.f32 %v1320_v17, %v817_v21  ;;  %1321 = vrcp.f32 %v686_v23  ;;  %v712_v33 = vand.u32 2147483648, %v686_v23  ;;  %v710_v34 = vand.u32 2147483647, %v686_v23 }
 0x367   : > { %vm706_vm8 = vweird.f32 %v686_v23 }
 0x368   : > { %v822_v26 = vsel %vm821_vm5, %v1320_v17, %v818_v24  ;;  %v713_v39 = vor.u32 1.1754944e-38, %v712_v33  ;;  %vm711_vm10 = vcmp.eq.f32.partialorder %v710_v34, 8.507059e+37 }
 0x369   : > { %v827_v27 = vsel %vm824_vm6, %v826_v25, %v822_v26 }
 0x36a   : > { %v842_v28 = vmul.f32 %v1828_v36, %v827_v27 }
 0x36b   : > { %v727_v49 = vpop.permute.xlu0 %726 }
 0x36c   : > { %v1322_v9 = vpop.eup %1321  ;;  %1166 = vst.msk [vmem:[%s1794_s9 + $0x30] sm:$0xff] %vm426_vm1, %v842_v28 }
 0x36d   : > { %v702_v29 = vmul.f32 %v1322_v9, %v686_v23  ;;  %v813_v30 = vpop.xlane.xlu2 %812  ;;  %vm707_vm7 = vweird.f32 %v1322_v9 }
 0x36e   : > { %1323 = vrcp.f32 %v813_v30  ;;  %vm708_vm9 = vmor %vm706_vm8, %vm707_vm7  ;;  %v839_v42 = vand.u32 2147483648, %v813_v30  ;;  %v837_v45 = vand.u32 2147483647, %v813_v30  ;;  %vm833_vm12 = vweird.f32 %v813_v30 }
 0x36f   : > { %v703_v31 = vsub.f32 1.0, %v702_v29 }
 0x370   : > { %v840_v48 = vor.u32 1.1754944e-38, %v839_v42  ;;  %vm838_vm14 = vcmp.eq.f32.partialorder %v837_v45, 8.507059e+37 }
 0x371   : > { %v704_v32 = vmul.f32 %v1322_v9, %v703_v31 }
 0x373   : > { %v705_v35 = vadd.f32 %v1322_v9, %v704_v32 }
 0x374   : > { %v1324_v37 = vpop.eup %1323 }
 0x375   : > { %v709_v38 = vsel %vm708_vm9, %v1322_v9, %v705_v35  ;;  %v829_v40 = vmul.f32 %v1324_v37, %v813_v30  ;;  %v683_v36 = vpop.xlane.xlu2 %682  ;;  %vm834_vm11 = vweird.f32 %v1324_v37 }
 0x376   : > { %1325 = vrcp.f32 %v683_v36  ;;  %v714_v41 = vsel %vm711_vm10, %v713_v39, %v709_v38  ;;  %vm835_vm13 = vmor %vm833_vm12, %vm834_vm11  ;;  %v698_v57 = vand.u32 2147483648, %v683_v36  ;;  %v696_v59 = vand.u32 2147483647, %v683_v36 }
 0x377   : > { %v830_v13 = vsub.f32 1.0, %v829_v40  ;;  %v716_v43 = vmul.f32 %v1833_v55, %v714_v41  ;;  %vm692_vm0 = vweird.f32 %v683_v36 }
 0x378   : > { %v699_v62 = vor.u32 1.1754944e-38, %v698_v57  ;;  %vm697_vm3 = vcmp.eq.f32.partialorder %v696_v59, 8.507059e+37 }
 0x379   : > { %v831_v44 = vmul.f32 %v1324_v37, %v830_v13  ;;  %1155 = vst.msk [vmem:[%s1794_s9 + $0x28] sm:$0xff] %vm426_vm1, %v716_v43 }
 0x37b   : > { %v832_v46 = vadd.f32 %v1324_v37, %v831_v44 }
 0x37c   : > { %v1326_v47 = vpop.eup %1325 }
 0x37d   : > { %v836_v50 = vsel %vm835_vm13, %v1324_v37, %v832_v46  ;;  %v688_v51 = vmul.f32 %v1326_v47, %v683_v36  ;;  %v600_v52 = vpop.permute.xlu1 %599  ;;  %v854_v53 = vpop.permute.xlu2 %853  ;;  %vm693_vm15 = vweird.f32 %v1326_v47 }
 0x37e   : > { %612 = vmatpush.bf16.msra.mxu3 %v600_v52  ;;  %866 = vmatpush.bf16.msrb.mxu2 %v854_v53  ;;  %v841_v54 = vsel %vm838_vm14, %v840_v48, %v836_v50  ;;  %vm694_vm2 = vmor %vm692_vm0, %vm693_vm15 }
 0x37f   : > { %v689_v55 = vsub.f32 1.0, %v688_v51  ;;  %v843_v56 = vmul.f32 %v1846_v7, %v841_v54 }
 0x381   : > { %v690_v58 = vmul.f32 %v1326_v47, %v689_v55  ;;  %1148 = vmatmul.msk.bf16.vlgmr.msra.gmra.mxu3 %vm426_vm1, %v593_v10  ;;  %1167 = vst.msk [vmem:[%s1794_s9 + $0x38] sm:$0xff] %vm426_vm1, %v843_v56  ;;  %v847_v60 = vpack.c.bf16 %v843_v56, %v842_v28 }
 0x382   : > { %739 = vmatpush.bf16.msrb.mxu3 %v727_v49 }
 0x383   : > { %v691_v61 = vadd.f32 %v1326_v47, %v690_v58  ;;  %1172 = vmatmul.msk.bf16.vlgmr.msrb.gmra.mxu2 %vm426_vm1, %v847_v60 }
 0x385   : > { %v695_v0 = vsel %vm694_vm2, %v1326_v47, %v691_v61 }
 0x386   : > { %v700_v1 = vsel %vm697_vm3, %v699_v62, %v695_v0 }
 0x387   : > { %v715_v2 = vmul.f32 %v1856_v11, %v700_v1 }
 0x389   : > { %1154 = vst.msk [vmem:[%s1794_s9 + $0x20] sm:$0xff] %vm426_vm1, %v715_v2  ;;  %v720_v63 = vpack.c.bf16 %v716_v43, %v715_v2 }
 0x391   : > { %1160 = vmatmul.msk.bf16.vlgmr.msrb.gmra.mxu3 %vm426_vm1, %v720_v63 }
 0x404   : > { %v614_v3 = vpop.f32.mrf.mxu3 }
 0x405   : > { %621 = vrot.lane.b32.xlu0 %v614_v3, %s1578_s27 }
 0x406   : > { %v868_v5 = vpop.f32.mrf.mxu2 }
 0x40c   : > { %v616_v4 = vpop.f32.mrf.mxu3 }
 0x40d   : > { %623 = vrot.lane.b32.xlu1 %v616_v4, %s1578_s27 }
 0x414   : > { %v741_v6 = vpop.f32.mrf.mxu3 }
 0x415   : > { %875 = vrot.lane.b32.xlu1 %v868_v5, %s1576_s15  ;;  %748 = vrot.lane.b32.xlu2 %v741_v6, %s1577_s25 }
 0x416   : > { %1474 = shalt.err (!%p1471_p13)
}
 0x417   : > { %s1579_s6 = smov 128   ;;  %s1580_s14 = smov 8   ;;  %v870_v7 = vpop.f32.mrf.mxu2  ;;  %vm627_vm1 = vcmask 523520   ;;  %vm754_vm4 = vcmask 785920   ;;  %vm881_vm5 = vcmask 1048320  }
 0x418   : > { %1209 = dma.vmem_to_hbm [thread:$0]  (%p1702_p0), %s924_s8, 1024, %s926_s11, %s890_s17, %s1579_s6, %s1579_s6, %s1580_s14  }
 0x419   : > { %s1192_s27 = sshll.u32 %s1561_s21, 4  ;;  %s904_s9 = sshll.u32 %s1806_s10, 4  ;;  %s905_s9 = int_to_ptr.vmem [resolvable:$true] %s904_s9 }
 0x41a   : > { %s885_s13 = scalar_lea.sflag [#allocation4], %s1744_s20  ;;  %s1495_s11 = scalar_lea.hbm %s1961_s4, 32 }
 0x41c   : > { %v743_v8 = vpop.f32.mrf.mxu3 }
 0x41d   : > { %877 = vrot.lane.b32.xlu2 %v870_v7, %s1576_s15  ;;  %750 = vrot.lane.b32.xlu0 %v743_v8, %s1577_s25  ;;  %s903_s25 = scalar_lea.hbm %s1961_s4, %s1192_s27 }
 0x41e   : > { %s906_s12 = sshll.u32 %s903_s25, 4  ;;  %s907_s12 = int_to_ptr.hbm [resolvable:$true] %s906_s12 }
 0x41f   : > { %s1489_s16 = sshra.s32 %s907_s12, 4  ;;  %s1490_s16 = int_to_ptr.hbm [resolvable:$true] %s1489_s16 }
 0x420   : > { %s1491_s21 = scalar_lea.hbm %s1490_s16, 16  ;;  %p1496_p6 = scmp.lt.s32.totalorder %s1490_s16, %s1961_s4 }
 0x421   : > { %p1492_p4 = scmp.ne.s32.totalorder %s1490_s16, %s1491_s21  ;;  %p1497_p7 = scmp.lt.s32.totalorder %s1495_s11, %s1491_s21 }
 0x423   : > { %p1493_p5 = pnand %p1492_p4, %p1702_p0  ;;  %p1498_p8 = por %p1497_p7, %p1496_p6 }
 0x425   : > { %p1494_p1 = pneg %p1493_p5 }
 0x427   : > { %p1499_p9 = pnand %p1498_p8, %p1494_p1 }
 0x46f   : > { %v749_v11 = vpop.permute.xlu2 %748 }
 0x477   : > { %v622_v10 = vpop.permute.xlu0 %621  ;;  %v878_v16 = vpop.permute.xlu2 %877 }
 0x478   : > { %628 = vst.msk [vmem:[%s1806_s10] sm:$0xff] %vm627_vm1, %v622_v10 }
 0x479   : > { %755 = vst.msk [vmem:[%s1806_s10] sm:$0xff] %vm754_vm4, %v749_v11 }
 0x47f   : > { %v624_v12 = vpop.permute.xlu1 %623 }
 0x480   : > { %629 = vst.msk [vmem:[%s1806_s10 + $0x8] sm:$0xff] %vm627_vm1, %v624_v12 }
 0x487   : > { %v876_v14 = vpop.permute.xlu1 %875 }
 0x488   : > { %882 = vst.msk [vmem:[%s1806_s10] sm:$0xff] %vm881_vm5, %v876_v14 }
 0x48f   : > { %v751_v15 = vpop.permute.xlu0 %750 }
 0x490   : > { %756 = vst.msk [vmem:[%s1806_s10 + $0x8] sm:$0xff] %vm754_vm4, %v751_v15 }
 0x491   : > { %883 = vst.msk [vmem:[%s1806_s10 + $0x8] sm:$0xff] %vm881_vm5, %v878_v16 }
 0x492   : > { %1502 = shalt.err (!%p1499_p9)
}
 0x493   : > { %1208 = dma.vmem_to_hbm [thread:$0]  (%p1702_p0), %s905_s9, 256, %s907_s12, %s885_s13, %s1579_s6, %s1579_s6, %s1580_s14  }
 0x494 PF: > { %s1986_s10 = sld [smem:[#allocation20_spill]]  ;;  %s940_s1 = sand.u32 1, %s1549_s18  }
 0x495   : > { %p1227_p10 = pnand %p1110_p3, %p1706_p2  ;;  %s941_s22 = scalar_lea.sflag [#allocation4], %s940_s1 }
 0x497   : > { %p1228_p11 = pneg %p1227_p10 }
 0x499   : > { %1540 = dma.done.wait (%p1228_p11), %s941_s22, 256  }
 0x49a   : > { %1542 = vsyncadd (%p1228_p11), %s941_s22, 4294967040  ;;  %s951_s23 = scalar_lea.sflag [#allocation12], %s940_s1 }
 0x49b   : > { %1544 = dma.done.wait (%p1228_p11), %s951_s23, 1024  }
 0x49c   : > { %1546 = vsyncadd (%p1228_p11), %s951_s23, 4294966272  ;;  %s29_s23 = sadd.s32 1, %s1986_s10   ;;  %s1987_s28 = sld [smem:[#allocation18_spill]] }
 0x49d   : > { %p26_p12 = scmp.ge.s32.totalorder %s29_s23, 4   ;;  %s1988_s20 = sld [smem:[#allocation22_spill]] }
 0x49e   : > { %s1989_s21 = sld [smem:[#allocation19_spill]]  ;;  %s1991_s18 = smov %s1553_s19 }
 0x49f   : > { %s1990_s22 = sld [smem:[#allocation21_spill]]  ;;  %28 = sbr.rel (!%p26_p12) target bundleno = 14 (0xe), region = 131 }
 0x4a2   : > { %s1992_s19 = smov %s1987_s28 }
 0x4a4   :  { %957 = vsyncpa [#allocation3], 1 }
 0x4a5   :  { %959 = vsyncpa [#allocation3 + $0x1], 1 }
 0x4a6   :  { %960 = vsyncpa [#allocation6], 1 }
 0x4a7   :  { %962 = vsyncpa [#allocation6 + $0x1], 1 }
 0x4a8   :  { %963 = vsyncpa [#allocation9], 1 }
 0x4a9   :  { %965 = vsyncpa [#allocation9 + $0x1], 1 }
 0x4aa   :  { %966 = vsyncpa [#allocation4], 1 }
 0x4ab   :  { %968 = vsyncpa [#allocation4 + $0x1], 1 }
 0x4ac   :  { %969 = vsyncpa [#allocation12], 1 }
 0x4ad   :  { %971 = vsyncpa [#allocation12 + $0x1], 1 }

</bundles_post_ra>
